<compile_context>
chip_gen: v6e
topology: v6e:2x2x1
jax: 0.10.0
libtpu: 0.0.40
codegen_flags: <defaults>
</compile_context>

<pallas_src>
import functools

import jax
import jax.numpy as jnp
from jax import lax
from jax.experimental import pallas as pl
from jax.experimental.pallas import tpu as pltpu


def _tab_kernel(kernel_size, dilations, seq_len,
                x_ref, w1_ref, w2_ref, p_ref, seg_ref, segt_ref, t_ref, o_ref):
    C, L = x_ref.shape
    x = x_ref[...]                       # (C, L) f32, L = B*T (lane-dense)
    seg = seg_ref[...]                   # (L, B) per-sample one-hot (lanes -> sample)
    segt = segt_ref[...]                 # (B, L) broadcast-back matrix
    local_t = t_ref[...]                 # (1, L) int32: time index within each sample
    inv_ct = 1.0 / (C * seq_len)         # 1 / (#elements in each GroupNorm group)
    eps = 1e-8                           # module uses GroupNorm(..., eps=1e-08)

    def causal_conv(h, w, bias, dilation):
        # Tap j of the causal dilated conv reads x[:, t - (k-1-j)*dilation].
        # Each tap is the input rolled along lanes (XLU slot), with lanes whose
        # within-sample time index t < shift zeroed out -- exactly the causal
        # left-zero-padding, and it also kills any cross-sample leakage.
        shifts = [(kernel_size - 1 - j) * dilation for j in range(kernel_size)]
        taps = []
        for s in shifts:
            if s == 0:
                taps.append(h)
            else:
                rolled = pltpu.roll(h, s, 1)
                taps.append(jnp.where(local_t >= s, rolled, 0.0))
        stacked = taps[0] if len(taps) == 1 else jnp.concatenate(taps, axis=0)
        # Single fused MXU matmul for all k taps: (C, k*C) @ (k*C, L).
        return jnp.dot(w, stacked, preferred_element_type=jnp.float32) + bias

    def group_norm1_relu(y, gamma, beta):
        # Per-sample mean/var over the full (C, seq_len) group.
        # Channel (sublane) reduction FIRST -> a single (1, L) row, then two
        # tiny segment matmuls: (1,L)@(L,B) sums each sample's lanes and
        # (1,B)@(B,L) broadcasts the per-sample value back to every lane of
        # that sample.  The centered tensor is reused for variance + normalize.
        csum = jnp.sum(y, axis=0, keepdims=True)                        # (1, L)
        mean = jnp.dot(
            jnp.dot(csum, seg, preferred_element_type=jnp.float32),
            segt, preferred_element_type=jnp.float32) * inv_ct          # (1, L)
        cen = y - mean
        vsum = jnp.sum(cen * cen, axis=0, keepdims=True)                # (1, L)
        var = jnp.dot(
            jnp.dot(vsum, seg, preferred_element_type=jnp.float32),
            segt, preferred_element_type=jnp.float32) * inv_ct          # (1, L)
        return jnp.maximum(cen * lax.rsqrt(var + eps) * gamma + beta, 0.0)

    # Static loop over the fused dilation stack; activation h stays in VMEM.
    h = x
    for layer, dil in enumerate(dilations):
        w1 = w1_ref[layer]               # (C, k*C)
        w2 = w2_ref[layer]               # (C, k*C)
        p = p_ref[layer]                 # (C, 6) packed per-channel params
        b1, g1, be1 = p[:, 0:1], p[:, 1:2], p[:, 2:3]
        b2, g2, be2 = p[:, 3:4], p[:, 4:5], p[:, 5:6]

        # block_1: CausalConv1d -> GroupNorm(1, eps=1e-8) -> ReLU -> SpatialDropout
        h1 = group_norm1_relu(causal_conv(h, w1, b1, dil), g1, be1)
        # TODO(synk): SpatialDropout is identity at inference; training-mode
        # per-channel dropout masks are not implemented here.

        # block_2: same structure, applied to block_1's output.
        h2 = group_norm1_relu(causal_conv(h1, w2, b2, dil), g2, be2)

        # F_x = layer_input * sigmoid(block_2(block_1(layer_input)))
        h = h * jax.nn.sigmoid(h2)

    o_ref[...] = h.astype(o_ref.dtype)


def temporal_aware_stack(x, layer_params, kernel_size, dilations):
    """Fused stack of Temporal_Aware_Blocks in a single pallas_call.

    x: (B, C, T) f32.  layer_params: sequence (one per dilation) of tuples
    (w1, b1, g1, be1, w2, b2, ge2, be2) with conv weights in PyTorch layout
    (Cout, Cin, k) and per-channel vectors (C,).  (weight_norm is a
    reparameterization; the effective weight is used here.)
    """
    B, C, T = x.shape
    L = B * T
    n = len(dilations)
    assert len(layer_params) == n
    for d in dilations:
        assert (kernel_size - 1) * d < T, "causal shift must stay within a sample"

    # ---- wrapper-side layout plumbing (presents a lane-dense slab) ----
    # TODO(synk): at production sizes fuse this relayout into the producer (or
    # tile the kernel over B with lane-padded (C, T) blocks) to avoid the extra
    # HBM round trip; at demo sizes it is negligible.
    x2d = jnp.transpose(x, (1, 0, 2)).reshape(C, L).astype(jnp.float32)

    # Fuse the k dilation taps: (Cout, Cin, k) -> (Cout, k*Cin), tap-major.
    def flatten_w(w):
        return jnp.transpose(w, (0, 2, 1)).reshape(
            C, kernel_size * C).astype(jnp.float32)

    w1s = jnp.stack([flatten_w(p[0]) for p in layer_params])        # (n, C, k*C)
    w2s = jnp.stack([flatten_w(p[4]) for p in layer_params])        # (n, C, k*C)
    # Pack per-channel params per layer: [b1, g1, be1, b2, g2, be2] -> (n, C, 6).
    pch = jnp.stack([
        jnp.stack([p[1], p[2], p[3], p[5], p[6], p[7]], axis=1)
        for p in layer_params]).astype(jnp.float32)

    # Per-sample constants: within-sample time index for the causal masks and
    # the skinny segment matrices for per-sample GroupNorm statistics.
    lane = jnp.arange(L, dtype=jnp.int32)
    tvec = (lane % T).reshape(1, L)
    samp = lane // T
    seg = (samp[:, None] == jnp.arange(B, dtype=jnp.int32)[None, :]
           ).astype(jnp.float32)                                     # (L, B)
    segt = jnp.transpose(seg)                                        # (B, L)

    kern = functools.partial(_tab_kernel, kernel_size, tuple(dilations), T)
    out2d = pl.pallas_call(
        kern,
        out_shape=jax.ShapeDtypeStruct((C, L), x.dtype),
        grid_spec=pltpu.PrefetchScalarGridSpec(
            num_scalar_prefetch=0,
            grid=(1,),  # whole problem fits comfortably in VMEM at these sizes
            # TODO(synk): for long sequences / large batches, tile along B
            # with a leading "parallel" grid axis (engages the 2nd TC on v7x;
            # GN stats are per-sample so no cross-block reduction is needed),
            # size lane tiles as 256-multiples on v6e/v7x, and mark the
            # grid-invariant operands pipeline_mode=pl.Buffered(1).
            in_specs=[
                pl.BlockSpec((C, L), lambda i: (0, 0)),                       # x
                pl.BlockSpec((n, C, kernel_size * C), lambda i: (0, 0, 0)),   # w1 stack
                pl.BlockSpec((n, C, kernel_size * C), lambda i: (0, 0, 0)),   # w2 stack
                pl.BlockSpec((n, C, 6), lambda i: (0, 0, 0)),                 # packed params
                pl.BlockSpec((L, B), lambda i: (0, 0)),                       # segment one-hot
                pl.BlockSpec((B, L), lambda i: (0, 0)),                       # broadcast-back
                pl.BlockSpec((1, L), lambda i: (0, 0)),                       # local time idx
            ],
            out_specs=pl.BlockSpec((C, L), lambda i: (0, 0)),
        ),
        compiler_params=pltpu.CompilerParams(
            dimension_semantics=("arbitrary",)),
    )(x2d, w1s, w2s, pch, seg, segt, tvec)

    # (C, B*T) -> (B, C, T)
    return jnp.transpose(out2d.reshape(C, B, T), (1, 0, 2)).astype(x.dtype)


def temporal_aware_block(x, params, kernel_size, dilation):
    """Single Temporal_Aware_Block (the original module's forward)."""
    return temporal_aware_stack(x, [params], kernel_size, [dilation])


def jax_reference(x, params, kernel_size, dilation):
    """Pure-JAX reference mirroring the PyTorch forward (eval mode)."""
    w1, b1, g1, be1, w2, b2, g2, be2 = params

    def conv(h, w, b):
        y = lax.conv_general_dilated(
            h, w, window_strides=(1,),
            padding=[((kernel_size - 1) * dilation, 0)],
            rhs_dilation=(dilation,),
            dimension_numbers=('NCH', 'OIH', 'NCH'))
        return y + b[None, :, None]

    def gn_relu(y, g, be):
        mean = jnp.mean(y, axis=(1, 2), keepdims=True)
        var = jnp.mean((y - mean) ** 2, axis=(1, 2), keepdims=True)
        yn = (y - mean) / jnp.sqrt(var + 1e-8)
        return jax.nn.relu(yn * g[None, :, None] + be[None, :, None])

    h1 = gn_relu(conv(x, w1, b1), g1, be1)
    h2 = gn_relu(conv(h1, w2, b2), g2, be2)
    return x * jax.nn.sigmoid(h2)


def _make_params(key, C, kernel_size):
    kw1, kw2, kb1, kb2 = jax.random.split(key, 4)
    # Conv weights in PyTorch (Cout, Cin, k) layout, init ~ N(0, 0.01).
    w1 = 0.01 * jax.random.normal(kw1, (C, C, kernel_size), jnp.float32)
    w2 = 0.01 * jax.random.normal(kw2, (C, C, kernel_size), jnp.float32)
    b1 = 0.01 * jax.random.normal(kb1, (C,), jnp.float32)
    b2 = 0.01 * jax.random.normal(kb2, (C,), jnp.float32)
    g1 = jnp.ones((C,), jnp.float32)
    be1 = jnp.zeros((C,), jnp.float32)
    g2 = jnp.ones((C,), jnp.float32)
    be2 = jnp.zeros((C,), jnp.float32)
    return (w1, b1, g1, be1, w2, b2, g2, be2)


if __name__ == "__main__":
    B, C, T = 2, 32, 64              # batch, nb_filters, sequence length
    kernel_size = 2                  # TIMNet-style causal conv

    key = jax.random.PRNGKey(0)
    kx, kp0, kp1, kp2 = jax.random.split(key, 4)
    x = jax.random.normal(kx, (B, C, T), jnp.float32)

    # ---- 1) single Temporal_Aware_Block (the original module, dilation=2) ----
    dilation = 2
    params = _make_params(kp0, C, kernel_size)
    out = temporal_aware_block(x, params, kernel_size, dilation)
    out = jax.block_until_ready(out)
    ref = jax_reference(x, params, kernel_size, dilation)
    assert out.shape == (B, C, T)
    max_err = float(jnp.max(jnp.abs(out - ref)))
    assert jnp.allclose(out, ref, atol=3e-5, rtol=1e-5), max_err

    # ---- 2) fused dilation stack (1, 2, 4) in a single pallas_call ----
    dilations = (1, 2, 4)
    stack_params = [_make_params(k, C, kernel_size) for k in (kp0, kp1, kp2)]
    out_s = temporal_aware_stack(x, stack_params, kernel_size, dilations)
    out_s = jax.block_until_ready(out_s)
    ref_s = x
    for p, d in zip(stack_params, dilations):
        ref_s = jax_reference(ref_s, p, kernel_size, d)
    max_err_s = float(jnp.max(jnp.abs(out_s - ref_s)))
    assert jnp.allclose(out_s, ref_s, atol=1e-4, rtol=1e-4), max_err_s

    print("KERNEL_OK")
</pallas_src>

<mosaic_0001>
module attributes {stable_mosaic.version = 11 : i64} {
  func.func @_tab_kernel(%arg0: i32, %arg1: memref<32x128xf32, #tpu.memory_space<vmem>>, %arg2: memref<1x32x64xf32, #tpu.memory_space<vmem>>, %arg3: memref<1x32x64xf32, #tpu.memory_space<vmem>>, %arg4: memref<1x32x6xf32, #tpu.memory_space<vmem>>, %arg5: memref<128x2xf32, #tpu.memory_space<vmem>>, %arg6: memref<2x128xf32, #tpu.memory_space<vmem>>, %arg7: memref<1x128xi32, #tpu.memory_space<vmem>>, %arg8: memref<32x128xf32, #tpu.memory_space<vmem>>) attributes {dimension_semantics = [#tpu.dimension_semantics<arbitrary>], iteration_bounds = array<i64: 1>, scalar_prefetch = 0 : i64, scratch_operands = 0 : i64, tpu.core_type = #tpu.core_type<tc>, window_params = [{pipeline_mode = #tpu.pipeline_mode<synchronous>, transform_indices = @transform_0, window_bounds = array<i64: 32, 128>}, {pipeline_mode = #tpu.pipeline_mode<synchronous>, transform_indices = @transform_1, window_bounds = array<i64: 1, 32, 64>}, {pipeline_mode = #tpu.pipeline_mode<synchronous>, transform_indices = @transform_2, window_bounds = array<i64: 1, 32, 64>}, {pipeline_mode = #tpu.pipeline_mode<synchronous>, transform_indices = @transform_3, window_bounds = array<i64: 1, 32, 6>}, {pipeline_mode = #tpu.pipeline_mode<synchronous>, transform_indices = @transform_4, window_bounds = array<i64: 128, 2>}, {pipeline_mode = #tpu.pipeline_mode<synchronous>, transform_indices = @transform_5, window_bounds = array<i64: 2, 128>}, {pipeline_mode = #tpu.pipeline_mode<synchronous>, transform_indices = @transform_6, window_bounds = array<i64: 1, 128>}, {pipeline_mode = #tpu.pipeline_mode<synchronous>, transform_indices = @transform_7, window_bounds = array<i64: 32, 128>}]} {
    %c0 = arith.constant 0 : index
    %c0_0 = arith.constant 0 : index
    %0 = vector.load %arg1[%c0, %c0_0] : memref<32x128xf32, #tpu.memory_space<vmem>>, vector<32x128xf32>
    %c0_1 = arith.constant 0 : index
    %c0_2 = arith.constant 0 : index
    %1 = vector.load %arg5[%c0_1, %c0_2] : memref<128x2xf32, #tpu.memory_space<vmem>>, vector<128x2xf32>
    %c0_3 = arith.constant 0 : index
    %c0_4 = arith.constant 0 : index
    %2 = vector.load %arg6[%c0_3, %c0_4] : memref<2x128xf32, #tpu.memory_space<vmem>>, vector<2x128xf32>
    %c0_5 = arith.constant 0 : index
    %c0_6 = arith.constant 0 : index
    %3 = vector.load %arg7[%c0_5, %c0_6] : memref<1x128xi32, #tpu.memory_space<vmem>>, vector<1x128xi32>
    %c0_7 = arith.constant 0 : index
    %c0_8 = arith.constant 0 : index
    %c0_9 = arith.constant 0 : index
    %4 = vector.load %arg2[%c0_7, %c0_8, %c0_9] : memref<1x32x64xf32, #tpu.memory_space<vmem>>, vector<1x32x64xf32>
    %5 = vector.shape_cast %4 : vector<1x32x64xf32> to vector<32x64xf32>
    %c0_10 = arith.constant 0 : index
    %c0_11 = arith.constant 0 : index
    %c0_12 = arith.constant 0 : index
    %6 = vector.load %arg3[%c0_10, %c0_11, %c0_12] : memref<1x32x64xf32, #tpu.memory_space<vmem>>, vector<1x32x64xf32>
    %7 = vector.shape_cast %6 : vector<1x32x64xf32> to vector<32x64xf32>
    %c0_13 = arith.constant 0 : index
    %c0_14 = arith.constant 0 : index
    %c0_15 = arith.constant 0 : index
    %8 = vector.load %arg4[%c0_13, %c0_14, %c0_15] : memref<1x32x6xf32, #tpu.memory_space<vmem>>, vector<1x32x6xf32>
    %9 = vector.shape_cast %8 : vector<1x32x6xf32> to vector<32x6xf32>
    %10 = vector.extract_strided_slice %9 {offsets = [0, 0], sizes = [32, 1], strides = [1, 1]} : vector<32x6xf32> to vector<32x1xf32>
    %11 = vector.extract_strided_slice %9 {offsets = [0, 1], sizes = [32, 1], strides = [1, 1]} : vector<32x6xf32> to vector<32x1xf32>
    %12 = vector.extract_strided_slice %9 {offsets = [0, 2], sizes = [32, 1], strides = [1, 1]} : vector<32x6xf32> to vector<32x1xf32>
    %13 = vector.extract_strided_slice %9 {offsets = [0, 3], sizes = [32, 1], strides = [1, 1]} : vector<32x6xf32> to vector<32x1xf32>
    %14 = vector.extract_strided_slice %9 {offsets = [0, 4], sizes = [32, 1], strides = [1, 1]} : vector<32x6xf32> to vector<32x1xf32>
    %15 = vector.extract_strided_slice %9 {offsets = [0, 5], sizes = [32, 1], strides = [1, 1]} : vector<32x6xf32> to vector<32x1xf32>
    %c2_i32 = arith.constant 2 : i32
    %16 = tpu.dynamic_rotate %0 by %c2_i32 dim 1 : vector<32x128xf32>, i32 -> vector<32x128xf32>
    %c2_i32_16 = arith.constant 2 : i32
    %17 = vector.broadcast %c2_i32_16 : i32 to vector<1x128xi32>
    %18 = arith.cmpi sge, %3, %17 : vector<1x128xi32>
    %cst = arith.constant 0.000000e+00 : f32
    %19 = vector.shape_cast %18 : vector<1x128xi1> to vector<1x128xi1>
    %20 = vector.broadcast %19 : vector<1x128xi1> to vector<32x128xi1>
    %21 = vector.broadcast %cst : f32 to vector<32x128xf32>
    %22 = arith.select %20, %16, %21 : vector<32x128xi1>, vector<32x128xf32>
    %23 = tpu.concatenate %22, %0 in 0 : vector<32x128xf32>, vector<32x128xf32> -> vector<64x128xf32>
    %cst_17 = arith.constant dense<0.000000e+00> : vector<32x128xf32>
    %24 = tpu.matmul %5, %23, %cst_17 {dimension_numbers = #tpu.dot_dimension_numbers<[1], [0], [0], [1], [0, 0, 1, 1], [], []>} : vector<32x64xf32>, vector<64x128xf32>, vector<32x128xf32> -> vector<32x128xf32>
    %25 = vector.broadcast %10 : vector<32x1xf32> to vector<32x128xf32>
    %26 = arith.addf %24, %25 : vector<32x128xf32>
    %cst_18 = arith.constant dense<0.000000e+00> : vector<128xf32>
    %27 = vector.multi_reduction <add>, %26, %cst_18 [0] : vector<32x128xf32> to vector<128xf32>
    %28 = vector.shape_cast %27 : vector<128xf32> to vector<1x128xf32>
    %cst_19 = arith.constant dense<0.000000e+00> : vector<1x2xf32>
    %29 = tpu.matmul %28, %1, %cst_19 {dimension_numbers = #tpu.dot_dimension_numbers<[1], [0], [0], [1], [0, 0, 1, 1], [], []>} : vector<1x128xf32>, vector<128x2xf32>, vector<1x2xf32> -> vector<1x2xf32>
    %cst_20 = arith.constant dense<0.000000e+00> : vector<1x128xf32>
    %30 = tpu.matmul %29, %2, %cst_20 {dimension_numbers = #tpu.dot_dimension_numbers<[1], [0], [0], [1], [0, 0, 1, 1], [], []>} : vector<1x2xf32>, vector<2x128xf32>, vector<1x128xf32> -> vector<1x128xf32>
    %cst_21 = arith.constant 4.8828125E-4 : f32
    %31 = vector.broadcast %cst_21 : f32 to vector<1x128xf32>
    %32 = arith.mulf %30, %31 : vector<1x128xf32>
    %33 = vector.broadcast %32 : vector<1x128xf32> to vector<32x128xf32>
    %34 = arith.subf %26, %33 : vector<32x128xf32>
    %35 = arith.mulf %34, %34 : vector<32x128xf32>
    %cst_22 = arith.constant dense<0.000000e+00> : vector<128xf32>
    %36 = vector.multi_reduction <add>, %35, %cst_22 [0] : vector<32x128xf32> to vector<128xf32>
    %37 = vector.shape_cast %36 : vector<128xf32> to vector<1x128xf32>
    %cst_23 = arith.constant dense<0.000000e+00> : vector<1x2xf32>
    %38 = tpu.matmul %37, %1, %cst_23 {dimension_numbers = #tpu.dot_dimension_numbers<[1], [0], [0], [1], [0, 0, 1, 1], [], []>} : vector<1x128xf32>, vector<128x2xf32>, vector<1x2xf32> -> vector<1x2xf32>
    %cst_24 = arith.constant dense<0.000000e+00> : vector<1x128xf32>
    %39 = tpu.matmul %38, %2, %cst_24 {dimension_numbers = #tpu.dot_dimension_numbers<[1], [0], [0], [1], [0, 0, 1, 1], [], []>} : vector<1x2xf32>, vector<2x128xf32>, vector<1x128xf32> -> vector<1x128xf32>
    %cst_25 = arith.constant 4.8828125E-4 : f32
    %40 = vector.broadcast %cst_25 : f32 to vector<1x128xf32>
    %41 = arith.mulf %39, %40 : vector<1x128xf32>
    %cst_26 = arith.constant 9.99999993E-9 : f32
    %42 = vector.broadcast %cst_26 : f32 to vector<1x128xf32>
    %43 = arith.addf %41, %42 : vector<1x128xf32>
    %44 = math.rsqrt %43 : vector<1x128xf32>
    %45 = vector.broadcast %44 : vector<1x128xf32> to vector<32x128xf32>
    %46 = arith.mulf %34, %45 : vector<32x128xf32>
    %47 = vector.broadcast %11 : vector<32x1xf32> to vector<32x128xf32>
    %48 = arith.mulf %46, %47 : vector<32x128xf32>
    %49 = vector.broadcast %12 : vector<32x1xf32> to vector<32x128xf32>
    %50 = arith.addf %48, %49 : vector<32x128xf32>
    %cst_27 = arith.constant 0.000000e+00 : f32
    %51 = vector.broadcast %cst_27 : f32 to vector<32x128xf32>
    %52 = arith.maximumf %50, %51 : vector<32x128xf32>
    %c2_i32_28 = arith.constant 2 : i32
    %53 = tpu.dynamic_rotate %52 by %c2_i32_28 dim 1 : vector<32x128xf32>, i32 -> vector<32x128xf32>
    %c2_i32_29 = arith.constant 2 : i32
    %54 = vector.broadcast %c2_i32_29 : i32 to vector<1x128xi32>
    %55 = arith.cmpi sge, %3, %54 : vector<1x128xi32>
    %cst_30 = arith.constant 0.000000e+00 : f32
    %56 = vector.shape_cast %55 : vector<1x128xi1> to vector<1x128xi1>
    %57 = vector.broadcast %56 : vector<1x128xi1> to vector<32x128xi1>
    %58 = vector.broadcast %cst_30 : f32 to vector<32x128xf32>
    %59 = arith.select %57, %53, %58 : vector<32x128xi1>, vector<32x128xf32>
    %60 = tpu.concatenate %59, %52 in 0 : vector<32x128xf32>, vector<32x128xf32> -> vector<64x128xf32>
    %cst_31 = arith.constant dense<0.000000e+00> : vector<32x128xf32>
    %61 = tpu.matmul %7, %60, %cst_31 {dimension_numbers = #tpu.dot_dimension_numbers<[1], [0], [0], [1], [0, 0, 1, 1], [], []>} : vector<32x64xf32>, vector<64x128xf32>, vector<32x128xf32> -> vector<32x128xf32>
    %62 = vector.broadcast %13 : vector<32x1xf32> to vector<32x128xf32>
    %63 = arith.addf %61, %62 : vector<32x128xf32>
    %cst_32 = arith.constant dense<0.000000e+00> : vector<128xf32>
    %64 = vector.multi_reduction <add>, %63, %cst_32 [0] : vector<32x128xf32> to vector<128xf32>
    %65 = vector.shape_cast %64 : vector<128xf32> to vector<1x128xf32>
    %cst_33 = arith.constant dense<0.000000e+00> : vector<1x2xf32>
    %66 = tpu.matmul %65, %1, %cst_33 {dimension_numbers = #tpu.dot_dimension_numbers<[1], [0], [0], [1], [0, 0, 1, 1], [], []>} : vector<1x128xf32>, vector<128x2xf32>, vector<1x2xf32> -> vector<1x2xf32>
    %cst_34 = arith.constant dense<0.000000e+00> : vector<1x128xf32>
    %67 = tpu.matmul %66, %2, %cst_34 {dimension_numbers = #tpu.dot_dimension_numbers<[1], [0], [0], [1], [0, 0, 1, 1], [], []>} : vector<1x2xf32>, vector<2x128xf32>, vector<1x128xf32> -> vector<1x128xf32>
    %cst_35 = arith.constant 4.8828125E-4 : f32
    %68 = vector.broadcast %cst_35 : f32 to vector<1x128xf32>
    %69 = arith.mulf %67, %68 : vector<1x128xf32>
    %70 = vector.broadcast %69 : vector<1x128xf32> to vector<32x128xf32>
    %71 = arith.subf %63, %70 : vector<32x128xf32>
    %72 = arith.mulf %71, %71 : vector<32x128xf32>
    %cst_36 = arith.constant dense<0.000000e+00> : vector<128xf32>
    %73 = vector.multi_reduction <add>, %72, %cst_36 [0] : vector<32x128xf32> to vector<128xf32>
    %74 = vector.shape_cast %73 : vector<128xf32> to vector<1x128xf32>
    %cst_37 = arith.constant dense<0.000000e+00> : vector<1x2xf32>
    %75 = tpu.matmul %74, %1, %cst_37 {dimension_numbers = #tpu.dot_dimension_numbers<[1], [0], [0], [1], [0, 0, 1, 1], [], []>} : vector<1x128xf32>, vector<128x2xf32>, vector<1x2xf32> -> vector<1x2xf32>
    %cst_38 = arith.constant dense<0.000000e+00> : vector<1x128xf32>
    %76 = tpu.matmul %75, %2, %cst_38 {dimension_numbers = #tpu.dot_dimension_numbers<[1], [0], [0], [1], [0, 0, 1, 1], [], []>} : vector<1x2xf32>, vector<2x128xf32>, vector<1x128xf32> -> vector<1x128xf32>
    %cst_39 = arith.constant 4.8828125E-4 : f32
    %77 = vector.broadcast %cst_39 : f32 to vector<1x128xf32>
    %78 = arith.mulf %76, %77 : vector<1x128xf32>
    %cst_40 = arith.constant 9.99999993E-9 : f32
    %79 = vector.broadcast %cst_40 : f32 to vector<1x128xf32>
    %80 = arith.addf %78, %79 : vector<1x128xf32>
    %81 = math.rsqrt %80 : vector<1x128xf32>
    %82 = vector.broadcast %81 : vector<1x128xf32> to vector<32x128xf32>
    %83 = arith.mulf %71, %82 : vector<32x128xf32>
    %84 = vector.broadcast %14 : vector<32x1xf32> to vector<32x128xf32>
    %85 = arith.mulf %83, %84 : vector<32x128xf32>
    %86 = vector.broadcast %15 : vector<32x1xf32> to vector<32x128xf32>
    %87 = arith.addf %85, %86 : vector<32x128xf32>
    %cst_41 = arith.constant 0.000000e+00 : f32
    %88 = vector.broadcast %cst_41 : f32 to vector<32x128xf32>
    %89 = arith.maximumf %87, %88 : vector<32x128xf32>
    %90 = arith.negf %89 : vector<32x128xf32>
    %91 = math.exp %90 : vector<32x128xf32>
    %cst_42 = arith.constant 1.000000e+00 : f32
    %92 = vector.broadcast %cst_42 : f32 to vector<32x128xf32>
    %93 = arith.addf %92, %91 : vector<32x128xf32>
    %94 = arith.divf %92, %93 : vector<32x128xf32>
    %95 = arith.mulf %0, %94 : vector<32x128xf32>
    %c0_43 = arith.constant 0 : index
    %c0_44 = arith.constant 0 : index
    %96 = vector.load %arg8[%c0_43, %c0_44] : memref<32x128xf32, #tpu.memory_space<vmem>>, vector<32x128xf32>
    tpu.vector_store %arg8[%c0_43, %c0_44], %95 {strides = array<i32>} : memref<32x128xf32, #tpu.memory_space<vmem>>, vector<32x128xf32>,
    return
  }
  func.func @transform_0(%arg0: i32) -> (i32, i32) {
    %c0_i32 = arith.constant 0 : i32
    %c0_i32_0 = arith.constant 0 : i32
    %c0_i32_1 = arith.constant 0 : i32
    return %c0_i32, %c0_i32_0 : i32, i32
  }
  func.func @transform_1(%arg0: i32) -> (i32, i32, i32) {
    %c0_i32 = arith.constant 0 : i32
    %c0_i32_0 = arith.constant 0 : i32
    %c0_i32_1 = arith.constant 0 : i32
    %c0_i32_2 = arith.constant 0 : i32
    return %c0_i32, %c0_i32_0, %c0_i32_1 : i32, i32, i32
  }
  func.func @transform_2(%arg0: i32) -> (i32, i32, i32) {
    %c0_i32 = arith.constant 0 : i32
    %c0_i32_0 = arith.constant 0 : i32
    %c0_i32_1 = arith.constant 0 : i32
    %c0_i32_2 = arith.constant 0 : i32
    return %c0_i32, %c0_i32_0, %c0_i32_1 : i32, i32, i32
  }
  func.func @transform_3(%arg0: i32) -> (i32, i32, i32) {
    %c0_i32 = arith.constant 0 : i32
    %c0_i32_0 = arith.constant 0 : i32
    %c0_i32_1 = arith.constant 0 : i32
    %c0_i32_2 = arith.constant 0 : i32
    return %c0_i32, %c0_i32_0, %c0_i32_1 : i32, i32, i32
  }
  func.func @transform_4(%arg0: i32) -> (i32, i32) {
    %c0_i32 = arith.constant 0 : i32
    %c0_i32_0 = arith.constant 0 : i32
    %c0_i32_1 = arith.constant 0 : i32
    return %c0_i32, %c0_i32_0 : i32, i32
  }
  func.func @transform_5(%arg0: i32) -> (i32, i32) {
    %c0_i32 = arith.constant 0 : i32
    %c0_i32_0 = arith.constant 0 : i32
    %c0_i32_1 = arith.constant 0 : i32
    return %c0_i32, %c0_i32_0 : i32, i32
  }
  func.func @transform_6(%arg0: i32) -> (i32, i32) {
    %c0_i32 = arith.constant 0 : i32
    %c0_i32_0 = arith.constant 0 : i32
    %c0_i32_1 = arith.constant 0 : i32
    return %c0_i32, %c0_i32_0 : i32, i32
  }
  func.func @transform_7(%arg0: i32) -> (i32, i32) {
    %c0_i32 = arith.constant 0 : i32
    %c0_i32_0 = arith.constant 0 : i32
    %c0_i32_1 = arith.constant 0 : i32
    return %c0_i32, %c0_i32_0 : i32, i32
  }
}

</mosaic_0001>

<bundles_post_ra>
// kernel: tpu_custom_call.1
= control target key start
LH: loop header
LB: loop body
LE: loop exit
PB: predicated region body
PF: predicated region fallthrough
CT: control target
= control target key end

     0   :  { %vm100_vm0 = vcmask 523264   ;;  %s1520_s28 = smov 2   ;;  %v1521_v5 = vmov 0   ;;  %v1522_v8 = vmov 0.0   ;;  %s1986_s0 = inlined_call_operand.vmem [shape: f32[32,128], index: 0, kind: input, shape index: {}]   ;;  %s1987_s1 = inlined_call_operand.vmem [shape: f32[1,32,64], index: 1, kind: input, shape index: {}]   ;;  %s1988_s2 = inlined_call_operand.vmem [shape: f32[1,32,64], index: 2, kind: input, shape index: {}]   ;;  %s1989_s3 = inlined_call_operand.vmem [shape: f32[1,32,6], index: 3, kind: input, shape index: {}]   ;;  %s1990_s4 = inlined_call_operand.vmem [shape: f32[128,2], index: 4, kind: input, shape index: {}]   ;;  %s1991_s5 = inlined_call_operand.vmem [shape: f32[2,128], index: 5, kind: input, shape index: {}]   ;;  %s1992_s6 = inlined_call_operand.vmem [shape: s32[1,128], index: 6, kind: input, shape index: {}]   ;;  %s1993_s7 = inlined_call_operand.hbm [shape: f32[32,128], index: 7, kind: output, shape index: {}]  }
   0x1   :  { %v1575_v0 = vld [vmem:[%s1986_s0 + $0x18] sm:$0xff]  ;;  %v1580_v1 = vld [vmem:[%s1986_s0 + $0x8] sm:$0xff]  ;;  %v1589_v2 = vld [vmem:[%s1986_s0 + $0x10] sm:$0xff]  ;;  %1465 = vset.pattern.permute.xlu1 %v1521_v5  ;;  %1464 = vset.pattern.permute.xlu0 %v1521_v5 }
   0x2   :  { %67 = vrot.lane.b32.xlu0 %v1575_v0, %s1520_s28  ;;  %63 = vrot.lane.b32.xlu1 %v1580_v1, %s1520_s28  ;;  %v1594_v3 = vld [vmem:[%s1986_s0] sm:$0xff]  ;;  %v1606_v6 = vld [vmem:[%s1990_s4 + $0x78] sm:$0xff] }
   0x3   :  { %1248 = vmatprep.subr.mxu0 %v1575_v0  ;;  %v49_v4 = vld [vmem:[%s1987_s1] sm:$0xff]  ;;  %v1616_v7 = vld [vmem:[%s1989_s3 + $0x8] sm:$0xff]  ;;  %1270 = vmatprep.subr.mxu1 %v1522_v8 }
   0x4   :  { %1249 = vmatpush3.msra.mxu0 %v1575_v0  ;;  %1264 = vmatprep.mubr.msk.f32.mxu0 %vm100_vm0, %v49_v4 }
   0x5   :  { %1250 = vmatprep.subr.mxu0 %v1589_v2 }
   0x6   :  { %65 = vrot.lane.b32.xlu0 %v1589_v2, %s1520_s28  ;;  %61 = vrot.lane.b32.xlu1 %v1594_v3, %s1520_s28 }
   0x7   :  { %1251 = vmatpush3.msra.mxu0 %v1589_v2 }
   0x8   :  { %12 = vsyncpa [#allocation3], 0  ;;  %1252 = vmatprep.subr.mxu0 %v1580_v1  ;;  %v1623_v9 = vld [vmem:[%s1989_s3] sm:$0xff]  ;;  %1271 = vmatpush3.msra.mxu1 %v1606_v6  ;;  %v1631_v10 = vld [vmem:[%s1990_s4 + $0x70] sm:$0xff]  ;;  %v71_v15 = vlaneseq  ;;  %vm1523_vm3 = vmmov 0   ;;  %vm281_vm4 = vcmask 1041408  }
   0x9   :  { %1253 = vmatpush3.msra.mxu0 %v1580_v1  ;;  %1272 = vmatprep.subr.mxu1 %v1522_v8  ;;  %v1640_v11 = vld [vmem:[%s1989_s3 + $0x10] sm:$0xff]  ;;  %v1645_v12 = vld [vmem:[%s1990_s4 + $0x68] sm:$0xff]  ;;  %v1650_v13 = vld [vmem:[%s1989_s3 + $0x18] sm:$0xff]  ;;  %vm277_vm5 = vcmask 15360  }
   0xa   :  { %1254 = vmatprep.subr.mxu0 %v1594_v3  ;;  %87 = vperm.xlu1 %1465, %v1616_v7   ;;  %v1657_v14 = vld [vmem:[%s1990_s4 + $0x60] sm:$0xff]  ;;  %v72_v17 = vshrl.u32 %v71_v15, 7  ;;  %v50_v26 = vld [vmem:[%s1987_s1 + $0x8] sm:$0xff]  ;;  %v51_v27 = vld [vmem:[%s1987_s1 + $0x10] sm:$0xff] }
   0xb   :  { %1255 = vmatpush3.msra.mxu0 %v1594_v3  ;;  %82 = vperm.xlu0 %1464, %v1623_v9   ;;  %v48_v16 = vld [vmem:[%s1992_s6] sm:$0x1]  ;;  %v52_v28 = vld [vmem:[%s1987_s1 + $0x18] sm:$0xff]  ;;  %v1714_v30 = vld [vmem:[%s1990_s4 + $0x50] sm:$0xff] }
   0xc   :  { %1273 = vmatpush3.msra.mxu1 %v1631_v10  ;;  %vm69_vm1 = vcmp.ge.s32.totalorder %v48_v16, 2  ;;  %v1668_v18 = vsub.s32 0, %v72_v17  ;;  %v1707_v29 = vld [vmem:[%s1990_s4 + $0x58] sm:$0xff]  ;;  %v1721_v31 = vld [vmem:[%s1990_s4 + $0x48] sm:$0xff]  ;;  %v1728_v32 = vld [vmem:[%s1990_s4 + $0x40] sm:$0xff]  ;;  %1302 = vmatprep.mubr.msk.f32.mxu1 %vm1523_vm3, %v1522_v8 }
   0xd   :  { %1274 = vmatprep.subr.mxu1 %v1522_v8  ;;  %v70_v19 = vsel %vm69_vm1, 1, %v1521_v5  ;;  %v1735_v33 = vld [vmem:[%s1990_s4 + $0x38] sm:$0xff]  ;;  %v1742_v34 = vld [vmem:[%s1990_s4 + $0x30] sm:$0xff]  ;;  %v1749_v35 = vld [vmem:[%s1990_s4 + $0x28] sm:$0xff] }
   0xe   :  { %92 = vperm.xlu1 %1465, %v1640_v11   ;;  %1275 = vmatpush3.msra.mxu1 %v1645_v12  ;;  %v74_v20 = vrot.slane %v70_v19, %v1668_v18  ;;  %v1756_v36 = vld [vmem:[%s1990_s4 + $0x20] sm:$0xff]  ;;  %v1761_v37 = vld [vmem:[%s1990_s4 + $0x18] sm:$0xff]  ;;  %v1770_v38 = vld [vmem:[%s1990_s4 + $0x10] sm:$0xff] }
   0xf   :  { %97 = vperm.xlu0 %1464, %v1650_v13   ;;  %1276 = vmatprep.subr.mxu1 %v1522_v8  ;;  %v1779_v39 = vld [vmem:[%s1990_s4 + $0x8] sm:$0xff]  ;;  %v1786_v40 = vld [vmem:[%s1990_s4] sm:$0xff] }
  0x10   :  { %1277 = vmatpush3.msra.mxu1 %v1657_v14  ;;  %vm1671_vm2 = vcmp.eq.s32.totalorder %v74_v20, 1  ;;  %v1794_v41 = vld [vmem:[%s1991_s5] sm:$0x3] }
  0x11   :  { %1278 = vmatprep.subr.mxu1 %v1522_v8 }
  0x12   :  { %1279 = vmatpush3.msra.mxu1 %v1707_v29 }
  0x13   :  { %1280 = vmatprep.subr.mxu1 %v1522_v8 }
  0x14   :  { %1281 = vmatpush3.msra.mxu1 %v1714_v30 }
  0x15   :  { %1282 = vmatprep.subr.mxu1 %v1522_v8 }
  0x16   :  { %1283 = vmatpush3.msra.mxu1 %v1721_v31 }
  0x17   :  { %1284 = vmatprep.subr.mxu1 %v1522_v8 }
  0x18   :  { %1285 = vmatpush3.msra.mxu1 %v1728_v32 }
  0x19   :  { %1286 = vmatprep.subr.mxu1 %v1522_v8 }
  0x1a   :  { %1287 = vmatpush3.msra.mxu1 %v1735_v33 }
  0x1b   :  { %1288 = vmatprep.subr.mxu1 %v1522_v8 }
  0x1c   :  { %1289 = vmatpush3.msra.mxu1 %v1742_v34 }
  0x1d   :  { %1290 = vmatprep.subr.mxu1 %v1522_v8 }
  0x1e   :  { %1291 = vmatpush3.msra.mxu1 %v1749_v35 }
  0x1f   :  { %1292 = vmatprep.subr.mxu1 %v1522_v8 }
  0x20   :  { %1293 = vmatpush3.msra.mxu1 %v1756_v36 }
  0x21   :  { %1294 = vmatprep.subr.mxu1 %v1522_v8 }
  0x22   :  { %1295 = vmatpush3.msra.mxu1 %v1761_v37 }
  0x23   :  { %1296 = vmatprep.subr.mxu1 %v1522_v8 }
  0x24   :  { %1297 = vmatpush3.msra.mxu1 %v1770_v38 }
  0x25   :  { %1298 = vmatprep.subr.mxu1 %v1522_v8 }
  0x26   :  { %1299 = vmatpush3.msra.mxu1 %v1779_v39 }
  0x27   :  { %1300 = vmatprep.subr.mxu1 %v1522_v8 }
  0x28   :  { %1301 = vmatpush3.msra.mxu1 %v1786_v40 }
  0x29   :  { %1345 = vmatprep.subr.mxu1 %v1522_v8 }
  0x74   :  { %v68_v22 = vpop.permute.xlu0 %67  ;;  %v64_v23 = vpop.permute.xlu1 %63 }
  0x75   :  { %1256 = vmatprep.subr.msk.mxu0 %vm1671_vm2, %v68_v22 }
  0x76   :  { %1257 = vmatpush3.msk.msra.mxu0 %vm1671_vm2, %v68_v22 }
  0x78   :  { %v66_v24 = vpop.permute.xlu0 %65  ;;  %v62_v25 = vpop.permute.xlu1 %61 }
  0x79   :  { %1258 = vmatprep.subr.msk.mxu0 %vm1671_vm2, %v66_v24 }
  0x7a   :  { %1259 = vmatpush3.msk.msra.mxu0 %vm1671_vm2, %v66_v24 }
  0x7b   :  { %1260 = vmatprep.subr.msk.mxu0 %vm1671_vm2, %v64_v23 }
  0x7c   :  { %1261 = vmatpush3.msk.msra.mxu0 %vm1671_vm2, %v64_v23 }
  0x7d   :  { %1262 = vmatprep.subr.msk.mxu0 %vm1671_vm2, %v62_v25 }
  0x7e   :  { %1263 = vmatpush3.msk.msra.mxu0 %vm1671_vm2, %v62_v25 }
  0x7f   :  { %1265 = vmatmul.mubr.msk.f32.vlgmr.msra.gmra.mxu0 %vm100_vm0, %v50_v26  ;;  %1305 = vmatprep.subr.mxu0 %v1522_v8 }
  0x80   :  { %1267 = vmatprep.mubr.msk.f32.mxu0 %vm100_vm0, %v51_v27  ;;  %1306 = vmatpush3.msk.msra.mxu0 %vm281_vm4, %v1794_v41 }
  0x81   :  { %1310 = vmatprep.subr.mxu0 %v1522_v8 }
  0x83   :  { %1268 = vmatmul.mubr.msk.f32.gmra.mxu0 %vm100_vm0, %v52_v28 }
  0x84   :  { %1307 = vmatprep.mubr.msk.f32.mxu0 %vm1523_vm3, %v1522_v8 }
  0x85   :  { %v88_v42 = vpop.permute.xlu1 %87 }
  0x86   :  { %v83_v43 = vpop.permute.xlu0 %82 }
  0x89   :  { %v93_v49 = vpop.permute.xlu1 %92 }
  0x8a   :  { %v98_v50 = vpop.permute.xlu0 %97 }
 0x13f   :  { %v1266_v44 = vpop.f32.mrf.mxu0 }
 0x140   :  { %v185_v48 = vadd.f32 %v1266_v44, %v88_v42 }
 0x141   :  { %v179_v45 = vpop.f32.mrf.mxu0 }
 0x142   :  { %v180_v46 = vadd.f32 %v179_v45, %v83_v43 }
 0x143   :  { %v1269_v47 = vpop.f32.mrf.mxu0 }
 0x144   :  { %v198_v52 = vadd.f32 %v185_v48, %v180_v46  ;;  %v195_v54 = vadd.f32 %v1269_v47, %v98_v50 }
 0x145   :  { %v189_v51 = vpop.f32.mrf.mxu0 }
 0x146   :  { %v190_v53 = vadd.f32 %v189_v51, %v93_v49 }
 0x148   :  { %v199_v55 = vadd.f32 %v198_v52, %v190_v53 }
 0x14a   :  { %v200_v56 = vadd.f32 %v199_v55, %v195_v54 }
 0x14c   :  { %v201_v57 = vrot.slane %v200_v56, 4 }
 0x14e   :  { %v202_v58 = vadd.f32 %v201_v57, %v200_v56 }
 0x150   :  { %v203_v59 = vrot.slane %v202_v58, 2 }
 0x152   :  { %v204_v60 = vadd.f32 %v203_v59, %v202_v58 }
 0x154   :  { %v205_v61 = vrot.slane %v204_v60, 1 }
 0x156   :  { %v206_v62 = vadd.f32 %v205_v61, %v204_v60 }
 0x158   :  { %1303 = vmatmul.mubr.f32.vlgmr.msra.gmra.mxu1 %v206_v62 }
 0x159   :  { %1346 = vmatpush3.msk.msra.mxu1 %vm281_vm4, %v1794_v41  ;;  %1347 = vmatprep.mubr.msk.f32.mxu1 %vm1523_vm3, %v1522_v8 }
 0x218   :  { %v273_v63 = vpop.f32.mrf.mxu1 }
 0x219   :  { %1308 = vmatmul.mubr.msk.f32.vlgmr.msra.gmra.mxu0 %vm277_vm5, %v273_v63 }
 0x21a   :  { %v1304_v4 = vpop.f32.mrf.mxu1  ;;  %1311 = vmatpush3.msra.mxu0 %v1606_v6  ;;  %1342 = vmatprep.mubr.msk.f32.mxu0 %vm1523_vm3, %v1522_v8 }
 0x21b   :  { %1312 = vmatprep.subr.mxu0 %v1522_v8 }
 0x21c   :  { %1313 = vmatpush3.msra.mxu0 %v1631_v10 }
 0x21d   :  { %1314 = vmatprep.subr.mxu0 %v1522_v8 }
 0x21e   :  { %1315 = vmatpush3.msra.mxu0 %v1645_v12 }
 0x21f   :  { %1316 = vmatprep.subr.mxu0 %v1522_v8 }
 0x220   :  { %1317 = vmatpush3.msra.mxu0 %v1657_v14 }
 0x221   :  { %1318 = vmatprep.subr.mxu0 %v1522_v8 }
 0x222   :  { %1319 = vmatpush3.msra.mxu0 %v1707_v29 }
 0x223   :  { %1320 = vmatprep.subr.mxu0 %v1522_v8 }
 0x224   :  { %1321 = vmatpush3.msra.mxu0 %v1714_v30 }
 0x225   :  { %1322 = vmatprep.subr.mxu0 %v1522_v8 }
 0x226   :  { %1323 = vmatpush3.msra.mxu0 %v1721_v31 }
 0x227   :  { %1324 = vmatprep.subr.mxu0 %v1522_v8 }
 0x228   :  { %1325 = vmatpush3.msra.mxu0 %v1728_v32 }
 0x229   :  { %1326 = vmatprep.subr.mxu0 %v1522_v8 }
 0x22a   :  { %1327 = vmatpush3.msra.mxu0 %v1735_v33 }
 0x22b   :  { %1328 = vmatprep.subr.mxu0 %v1522_v8 }
 0x22c   :  { %1329 = vmatpush3.msra.mxu0 %v1742_v34 }
 0x22d   :  { %1330 = vmatprep.subr.mxu0 %v1522_v8 }
 0x22e   :  { %1331 = vmatpush3.msra.mxu0 %v1749_v35 }
 0x22f   :  { %1332 = vmatprep.subr.mxu0 %v1522_v8 }
 0x230   :  { %1333 = vmatpush3.msra.mxu0 %v1756_v36 }
 0x231   :  { %1334 = vmatprep.subr.mxu0 %v1522_v8 }
 0x232   :  { %1335 = vmatpush3.msra.mxu0 %v1761_v37 }
 0x233   :  { %1336 = vmatprep.subr.mxu0 %v1522_v8 }
 0x234   :  { %1337 = vmatpush3.msra.mxu0 %v1770_v38 }
 0x235   :  { %1338 = vmatprep.subr.mxu0 %v1522_v8 }
 0x236   :  { %1339 = vmatpush3.msra.mxu0 %v1779_v39 }
 0x237   :  { %1340 = vmatprep.subr.mxu0 %v1522_v8 }
 0x238   :  { %1341 = vmatpush3.msra.mxu0 %v1786_v40 }
 0x239   :  { %1407 = vmatprep.subr.mxu0 %v1522_v8 }
 0x2d9   :  { %v351_v5 = vpop.f32.mrf.mxu0 }
 0x2da   :  { %v355_v15 = vmul.f32 0.00048828125, %v351_v5 }
 0x2db   :  { %v1309_v16 = vpop.f32.mrf.mxu0 }
 0x2dc   :  { %v359_v17 = vrot.slane %v355_v15, %v1668_v18 }
 0x2de   :  { %v360_v19 = vsub.f32 %v180_v46, %v359_v17  ;;  %v361_v20 = vsub.f32 %v185_v48, %v359_v17  ;;  %v362_v22 = vsub.f32 %v190_v53, %v359_v17  ;;  %v363_v23 = vsub.f32 %v195_v54, %v359_v17 }
 0x2df   :  { %v1524_v46 = vmov 1   ;;  %v1525_v48 = vmov 2  }
 0x2e0   :  { %v364_v24 = vmul.f32 %v360_v19, %v360_v19  ;;  %v365_v25 = vmul.f32 %v361_v20, %v361_v20  ;;  %v366_v26 = vmul.f32 %v362_v22, %v362_v22  ;;  %v367_v28 = vmul.f32 %v363_v23, %v363_v23  ;;  %1466 = vset.pattern.permute.xlu1 %v1524_v46 }
 0x2e1   :  { %1467 = vset.pattern.permute.xlu0 %v1524_v46  ;;  %544 = vperm.xlu1 %1466, %v1650_v13  }
 0x2e2   :  { %v368_v27 = vadd.f32 %v365_v25, %v364_v24  ;;  %540 = vperm.xlu0 %1467, %v1640_v11  }
 0x2e4   :  { %v369_v42 = vadd.f32 %v368_v27, %v366_v26 }
 0x2e5   :  { %1468 = vset.pattern.permute.xlu1 %v1525_v48 }
 0x2e6   :  { %v370_v43 = vadd.f32 %v369_v42, %v367_v28  ;;  %1470 = vset.pattern.permute.xlu0 %v1525_v48  ;;  %564 = vperm.xlu1 %1468, %v1650_v13   ;;  %v53_v28 = vld [vmem:[%s1988_s2] sm:$0xff] }
 0x2e7   :  { %560 = vperm.xlu0 %1470, %v1640_v11  }
 0x2e8   :  { %v371_v44 = vrot.slane %v370_v43, 4 }
 0x2ea   :  { %v372_v45 = vadd.f32 %v371_v44, %v370_v43  ;;  %1469 = vset.pattern.permute.xlu1 %v1524_v46 }
 0x2eb   :  { %552 = vperm.xlu0 %1470, %v1623_v9   ;;  %536 = vperm.xlu1 %1469, %v1616_v7  }
 0x2ec   :  { %v373_v47 = vrot.slane %v372_v45, 2 }
 0x2ee   :  { %v374_v49 = vadd.f32 %v373_v47, %v372_v45 }
 0x2ef   :  { %532 = vperm.xlu1 %1469, %v1623_v9  }
 0x2f0   :  { %v375_v50 = vrot.slane %v374_v49, 1 }
 0x2f2   :  { %v376_v51 = vadd.f32 %v375_v50, %v374_v49 }
 0x2f3   :  { %1471 = vset.pattern.permute.xlu1 %v1525_v48 }
 0x2f4   :  { %1343 = vmatmul.mubr.f32.vlgmr.msra.gmra.mxu0 %v376_v51  ;;  %556 = vperm.xlu1 %1471, %v1616_v7  }
 0x2f5   :  { %1408 = vmatpush3.msk.msra.mxu0 %vm281_vm4, %v1794_v41  ;;  %1409 = vmatprep.mubr.msk.f32.mxu0 %vm1523_vm3, %v1522_v8 }
 0x2f6   :  { %1412 = vmatprep.subr.mxu0 %v1522_v8 }
 0x35c   :  { %v545_v55 = vpop.permute.xlu1 %544 }
 0x35d   :  { %v541_v61 = vpop.permute.xlu0 %540 }
 0x361   :  { %v565_v59 = vpop.permute.xlu1 %564 }
 0x362   :  { %v561_v5 = vpop.permute.xlu0 %560 }
 0x366   :  { %v537_v60 = vpop.permute.xlu1 %536  ;;  %v553_v47 = vpop.permute.xlu0 %552 }
 0x36a   :  { %v533_v63 = vpop.permute.xlu1 %532 }
 0x36f   :  { %v557_v43 = vpop.permute.xlu1 %556 }
 0x3b4   :  { %v443_v52 = vpop.f32.mrf.mxu0 }
 0x3b5   :  { %1348 = vmatmul.mubr.msk.f32.vlgmr.msra.gmra.mxu1 %vm277_vm5, %v443_v52 }
 0x3b6   :  { %v1344_v53 = vpop.f32.mrf.mxu0  ;;  %1366 = vmatprep.mubr.msk.f32.mxu1 %vm100_vm0, %v53_v28 }
 0x475   :  { %v516_v54 = vpop.f32.mrf.mxu1 }
 0x476   :  { %v520_v56 = vmul.f32 0.00048828125, %v516_v54  ;;  %v54_v54 = vld [vmem:[%s1988_s2 + $0x8] sm:$0xff] }
 0x477   :  { %v1349_v57 = vpop.f32.mrf.mxu1 }
 0x478   :  { %v521_v58 = vadd.f32 1e-08, %v520_v56  ;;  %v56_v56 = vld [vmem:[%s1988_s2 + $0x18] sm:$0xff] }
 0x47a   :  { %1478 = vrsqrt.f32 %v521_v58 }
 0x487   :  { %v1479_v62 = vpop.eup %1478 }
 0x488   :  { %v526_v4 = vrot.slane %v1479_v62, %v1668_v18 }
 0x48a   :  { %v530_v15 = vmul.f32 %v526_v4, %v363_v23  ;;  %v528_v16 = vmul.f32 %v526_v4, %v361_v20  ;;  %v529_v17 = vmul.f32 %v526_v4, %v362_v22  ;;  %v527_v24 = vmul.f32 %v526_v4, %v360_v19 }
 0x48b   :  { %v1526_v22 = vmov 3  }
 0x48c   :  { %v550_v25 = vmul.f32 %v545_v55, %v530_v15  ;;  %v548_v26 = vmul.f32 %v537_v60, %v528_v16  ;;  %v549_v27 = vmul.f32 %v541_v61, %v529_v17  ;;  %v547_v42 = vmul.f32 %v533_v63, %v527_v24  ;;  %1472 = vset.pattern.permute.xlu1 %v1526_v22  ;;  %v55_v55 = vld [vmem:[%s1988_s2 + $0x10] sm:$0xff]  ;;  %s1529_s2 = smov [#allocation2]  }
 0x48d   :  { %1473 = vset.pattern.permute.xlu0 %v1526_v22  ;;  %s1109_s14 = sshll.u32 %s1529_s2, 4  ;;  %s1110_s14 = int_to_ptr.vmem [resolvable:$true] %s1109_s14 }
 0x48e   :  { %v570_v44 = vadd.f32 %v565_v59, %v550_v25  ;;  %v569_v45 = vadd.f32 %v561_v5, %v549_v27  ;;  %v568_v23 = vadd.f32 %v557_v43, %v548_v26  ;;  %v567_v20 = vadd.f32 %v553_v47, %v547_v42  ;;  %s1498_s15 = scalar_lea.vmem %s1110_s14, 512  ;;  %p1503_p1 = scmp.lt.s32.totalorder %s1110_s14, %s1110_s14 }
 0x48f   :  { %p1499_p0 = scmp.ne.s32.totalorder %s1110_s14, %s1498_s15  ;;  %p1504_p2 = scmp.lt.s32.totalorder %s1498_s15, %s1498_s15 }
 0x490   :  { %v574_v49 = vmax.f32 %v570_v44, 0.0  ;;  %v573_v50 = vmax.f32 %v569_v45, 0.0  ;;  %v572_v19 = vmax.f32 %v568_v23, 0.0  ;;  %v571_v51 = vmax.f32 %v567_v20, 0.0 }
 0x491   :  { %v1527_v20 = vmov 4   ;;  %p1505_p3 = por %p1504_p2, %p1503_p1 }
 0x492   :  { %581 = vrot.lane.b32.xlu1 %v574_v49, %s1520_s28  ;;  %1350 = vmatprep.subr.mxu1 %v574_v49 }
 0x493   :  { %579 = vrot.lane.b32.xlu0 %v573_v50, %s1520_s28  ;;  %1351 = vmatpush3.msra.mxu1 %v574_v49  ;;  %p1506_p4 = pnand %p1505_p3, %p1499_p0 }
 0x494   :  { %1352 = vmatprep.subr.mxu1 %v573_v50 }
 0x495   :  { %1353 = vmatpush3.msra.mxu1 %v573_v50 }
 0x496   :  { %577 = vrot.lane.b32.xlu1 %v572_v19, %s1520_s28  ;;  %1354 = vmatprep.subr.mxu1 %v572_v19 }
 0x497   :  { %575 = vrot.lane.b32.xlu0 %v571_v51, %s1520_s28  ;;  %1355 = vmatpush3.msra.mxu1 %v572_v19  ;;  %v1528_v19 = vmov 5  }
 0x498   :  { %1356 = vmatprep.subr.mxu1 %v571_v51 }
 0x499   :  { %1357 = vmatpush3.msra.mxu1 %v571_v51 }
 0x49a   :  { %588 = vperm.xlu1 %1472, %v1623_v9  }
 0x49b   :  { %592 = vperm.xlu0 %1473, %v1616_v7  }
 0x49e   :  { %596 = vperm.xlu1 %1472, %v1640_v11  }
 0x49f   :  { %1474 = vset.pattern.permute.xlu0 %v1527_v20 }
 0x4a0   :  { %1029 = vperm.xlu0 %1474, %v1623_v9  }
 0x4a2   :  { %600 = vperm.xlu1 %1472, %v1650_v13  }
 0x4a4   :  { %1041 = vperm.xlu0 %1474, %v1650_v13  }
 0x4a6   :  { %1475 = vset.pattern.permute.xlu1 %v1527_v20 }
 0x4a7   :  { %1033 = vperm.xlu1 %1475, %v1616_v7  }
 0x4a8   :  { %1477 = vset.pattern.permute.xlu0 %v1528_v19 }
 0x4a9   :  { %1053 = vperm.xlu0 %1477, %v1616_v7  }
 0x4ab   :  { %1037 = vperm.xlu1 %1475, %v1640_v11  }
 0x4af   :  { %1476 = vset.pattern.permute.xlu1 %v1528_v19 }
 0x4b0   :  { %1049 = vperm.xlu1 %1476, %v1623_v9  }
 0x4b4   :  { %1057 = vperm.xlu1 %1476, %v1640_v11  }
 0x4b8   :  { %1061 = vperm.xlu1 %1476, %v1650_v13  }
 0x504   :  { %v582_v46 = vpop.permute.xlu1 %581 }
 0x505   :  { %v580_v48 = vpop.permute.xlu0 %579  ;;  %1358 = vmatprep.subr.msk.mxu1 %vm1671_vm2, %v582_v46 }
 0x506   :  { %1359 = vmatpush3.msk.msra.mxu1 %vm1671_vm2, %v582_v46 }
 0x507   :  { %1360 = vmatprep.subr.msk.mxu1 %vm1671_vm2, %v580_v48 }
 0x508   :  { %v578_v52 = vpop.permute.xlu1 %577  ;;  %1361 = vmatpush3.msk.msra.mxu1 %vm1671_vm2, %v580_v48 }
 0x509   :  { %1362 = vmatprep.subr.msk.mxu1 %vm1671_vm2, %v578_v52  ;;  %v576_v53 = vpop.permute.xlu0 %575 }
 0x50a   :  { %1363 = vmatpush3.msk.msra.mxu1 %vm1671_vm2, %v578_v52 }
 0x50b   :  { %1364 = vmatprep.subr.msk.mxu1 %vm1671_vm2, %v576_v53 }
 0x50c   :  { %1365 = vmatpush3.msk.msra.mxu1 %vm1671_vm2, %v576_v53 }
 0x50d   :  { %1367 = vmatmul.mubr.msk.f32.vlgmr.msra.gmra.mxu1 %vm100_vm0, %v54_v54  ;;  %1372 = vmatprep.subr.mxu1 %v1522_v8 }
 0x50e   :  { %1369 = vmatprep.mubr.msk.f32.mxu1 %vm100_vm0, %v55_v55  ;;  %1373 = vmatpush3.msra.mxu1 %v1606_v6 }
 0x50f   :  { %1374 = vmatprep.subr.mxu1 %v1522_v8 }
 0x510   :  { %1375 = vmatpush3.msra.mxu1 %v1631_v10 }
 0x511   :  { %1370 = vmatmul.mubr.msk.f32.gmra.mxu1 %vm100_vm0, %v56_v56  ;;  %1376 = vmatprep.subr.mxu1 %v1522_v8 }
 0x512   :  { %1377 = vmatpush3.msra.mxu1 %v1645_v12  ;;  %1404 = vmatprep.mubr.msk.f32.mxu1 %vm1523_vm3, %v1522_v8 }
 0x513   :  { %1378 = vmatprep.subr.mxu1 %v1522_v8 }
 0x514   :  { %1379 = vmatpush3.msra.mxu1 %v1657_v14 }
 0x515   :  { %1380 = vmatprep.subr.mxu1 %v1522_v8  ;;  %v589_v21 = vpop.permute.xlu1 %588 }
 0x516   :  { %1381 = vmatpush3.msra.mxu1 %v1707_v29  ;;  %v593_v58 = vpop.permute.xlu0 %592 }
 0x517   :  { %1382 = vmatprep.subr.mxu1 %v1522_v8 }
 0x518   :  { %1383 = vmatpush3.msra.mxu1 %v1714_v30 }
 0x519   :  { %1384 = vmatprep.subr.mxu1 %v1522_v8  ;;  %v597_v59 = vpop.permute.xlu1 %596 }
 0x51a   :  { %1385 = vmatpush3.msra.mxu1 %v1721_v31 }
 0x51b   :  { %1386 = vmatprep.subr.mxu1 %v1522_v8 }
 0x51c   :  { %1387 = vmatpush3.msra.mxu1 %v1728_v32 }
 0x51d   :  { %1388 = vmatprep.subr.mxu1 %v1522_v8  ;;  %v601_v16 = vpop.permute.xlu1 %600 }
 0x51e   :  { %1389 = vmatpush3.msra.mxu1 %v1735_v33 }
 0x51f   :  { %1390 = vmatprep.subr.mxu1 %v1522_v8 }
 0x520   :  { %1391 = vmatpush3.msra.mxu1 %v1742_v34 }
 0x521   :  { %1392 = vmatprep.subr.mxu1 %v1522_v8 }
 0x522   :  { %1393 = vmatpush3.msra.mxu1 %v1749_v35  ;;  %v1034_v46 = vpop.permute.xlu1 %1033 }
 0x523   :  { %1394 = vmatprep.subr.mxu1 %v1522_v8 }
 0x524   :  { %1395 = vmatpush3.msra.mxu1 %v1756_v36 }
 0x525   :  { %1396 = vmatprep.subr.mxu1 %v1522_v8 }
 0x526   :  { %1397 = vmatpush3.msra.mxu1 %v1761_v37  ;;  %v1038_v55 = vpop.permute.xlu1 %1037 }
 0x527   :  { %1398 = vmatprep.subr.mxu1 %v1522_v8 }
 0x528   :  { %1399 = vmatpush3.msra.mxu1 %v1770_v38 }
 0x529   :  { %1400 = vmatprep.subr.mxu1 %v1522_v8 }
 0x52a   :  { %1401 = vmatpush3.msra.mxu1 %v1779_v39 }
 0x52b   :  { %1402 = vmatprep.subr.mxu1 %v1522_v8  ;;  %v1050_v56 = vpop.permute.xlu1 %1049 }
 0x52c   :  { %1403 = vmatpush3.msra.mxu1 %v1786_v40 }
 0x52d   :  { %1447 = vmatprep.subr.mxu1 %v1522_v8 }
 0x5cd   :  { %v1368_v57 = vpop.f32.mrf.mxu1 }
 0x5ce   :  { %v687_v63 = vadd.f32 %v1368_v57, %v593_v58  ;;  %v1058_v57 = vpop.permute.xlu1 %1057 }
 0x5cf   :  { %v681_v60 = vpop.f32.mrf.mxu1 }
 0x5d0   :  { %v682_v61 = vadd.f32 %v681_v60, %v589_v21  ;;  %v1030_v21 = vpop.permute.xlu0 %1029 }
 0x5d1   :  { %v1371_v62 = vpop.f32.mrf.mxu1 }
 0x5d2   :  { %v700_v5 = vadd.f32 %v687_v63, %v682_v61  ;;  %v697_v17 = vadd.f32 %v1371_v62, %v601_v16 }
 0x5d3   :  { %v691_v4 = vpop.f32.mrf.mxu1 }
 0x5d4   :  { %v692_v15 = vadd.f32 %v691_v4, %v597_v59  ;;  %v1042_v7 = vpop.permute.xlu0 %1041 }
 0x5d6   :  { %v701_v24 = vadd.f32 %v700_v5, %v692_v15 }
 0x5d8   :  { %v702_v25 = vadd.f32 %v701_v24, %v697_v17 }
 0x5da   :  { %v703_v26 = vrot.slane %v702_v25, 4 }
 0x5dc   :  { %v704_v27 = vadd.f32 %v703_v26, %v702_v25 }
 0x5de   :  { %v705_v28 = vrot.slane %v704_v27, 2 }
 0x5e0   :  { %v706_v42 = vadd.f32 %v705_v28, %v704_v27 }
 0x5e2   :  { %v707_v43 = vrot.slane %v706_v42, 1 }
 0x5e4   :  { %v708_v44 = vadd.f32 %v707_v43, %v706_v42 }
 0x5e6   :  { %1405 = vmatmul.mubr.f32.vlgmr.msra.gmra.mxu1 %v708_v44 }
 0x5e7   :  { %1448 = vmatpush3.msk.msra.mxu1 %vm281_vm4, %v1794_v41  ;;  %1449 = vmatprep.mubr.msk.f32.mxu1 %vm1523_vm3, %v1522_v8 }
 0x6a6   :  { %v775_v45 = vpop.f32.mrf.mxu1 }
 0x6a7   :  { %1410 = vmatmul.mubr.msk.f32.vlgmr.msra.gmra.mxu0 %vm277_vm5, %v775_v45 }
 0x6a8   :  { %v1406_v47 = vpop.f32.mrf.mxu1  ;;  %1413 = vmatpush3.msra.mxu0 %v1606_v6  ;;  %1444 = vmatprep.mubr.msk.f32.mxu0 %vm1523_vm3, %v1522_v8 }
 0x6a9   :  { %1414 = vmatprep.subr.mxu0 %v1522_v8 }
 0x6aa   :  { %1415 = vmatpush3.msra.mxu0 %v1631_v10 }
 0x6ab   :  { %1416 = vmatprep.subr.mxu0 %v1522_v8 }
 0x6ac   :  { %1417 = vmatpush3.msra.mxu0 %v1645_v12 }
 0x6ad   :  { %1418 = vmatprep.subr.mxu0 %v1522_v8 }
 0x6ae   :  { %1419 = vmatpush3.msra.mxu0 %v1657_v14 }
 0x6af   :  { %1420 = vmatprep.subr.mxu0 %v1522_v8 }
 0x6b0   :  { %1421 = vmatpush3.msra.mxu0 %v1707_v29 }
 0x6b1   :  { %1422 = vmatprep.subr.mxu0 %v1522_v8 }
 0x6b2   :  { %1423 = vmatpush3.msra.mxu0 %v1714_v30 }
 0x6b3   :  { %1424 = vmatprep.subr.mxu0 %v1522_v8 }
 0x6b4   :  { %1425 = vmatpush3.msra.mxu0 %v1721_v31 }
 0x6b5   :  { %1426 = vmatprep.subr.mxu0 %v1522_v8 }
 0x6b6   :  { %1427 = vmatpush3.msra.mxu0 %v1728_v32 }
 0x6b7   :  { %1428 = vmatprep.subr.mxu0 %v1522_v8 }
 0x6b8   :  { %1429 = vmatpush3.msra.mxu0 %v1735_v33 }
 0x6b9   :  { %1430 = vmatprep.subr.mxu0 %v1522_v8 }
 0x6ba   :  { %1431 = vmatpush3.msra.mxu0 %v1742_v34 }
 0x6bb   :  { %1432 = vmatprep.subr.mxu0 %v1522_v8 }
 0x6bc   :  { %1433 = vmatpush3.msra.mxu0 %v1749_v35 }
 0x6bd   :  { %1434 = vmatprep.subr.mxu0 %v1522_v8 }
 0x6be   :  { %1435 = vmatpush3.msra.mxu0 %v1756_v36 }
 0x6bf   :  { %1436 = vmatprep.subr.mxu0 %v1522_v8 }
 0x6c0   :  { %1437 = vmatpush3.msra.mxu0 %v1761_v37 }
 0x6c1   :  { %1438 = vmatprep.subr.mxu0 %v1522_v8 }
 0x6c2   :  { %1439 = vmatpush3.msra.mxu0 %v1770_v38 }
 0x6c3   :  { %1440 = vmatprep.subr.mxu0 %v1522_v8 }
 0x6c4   :  { %1441 = vmatpush3.msra.mxu0 %v1779_v39 }
 0x6c5   :  { %1442 = vmatprep.subr.mxu0 %v1522_v8 }
 0x6c6   :  { %1443 = vmatpush3.msra.mxu0 %v1786_v40 }
 0x767   :  { %v848_v6 = vpop.f32.mrf.mxu0 }
 0x768   :  { %v852_v10 = vmul.f32 0.00048828125, %v848_v6 }
 0x769   :  { %v1411_v12 = vpop.f32.mrf.mxu0 }
 0x76a   :  { %v856_v14 = vrot.slane %v852_v10, %v1668_v18 }
 0x76c   :  { %v857_v29 = vsub.f32 %v682_v61, %v856_v14  ;;  %v858_v30 = vsub.f32 %v687_v63, %v856_v14  ;;  %v859_v31 = vsub.f32 %v692_v15, %v856_v14  ;;  %v860_v32 = vsub.f32 %v697_v17, %v856_v14  ;;  %v1054_v61 = vpop.permute.xlu0 %1053  ;;  %v1062_v15 = vpop.permute.xlu1 %1061 }
 0x76e   :  { %v861_v33 = vmul.f32 %v857_v29, %v857_v29  ;;  %v862_v34 = vmul.f32 %v858_v30, %v858_v30  ;;  %v863_v35 = vmul.f32 %v859_v31, %v859_v31  ;;  %v864_v37 = vmul.f32 %v860_v32, %v860_v32 }
 0x770   :  { %v865_v36 = vadd.f32 %v862_v34, %v861_v33 }
 0x772   :  { %v866_v38 = vadd.f32 %v865_v36, %v863_v35 }
 0x774   :  { %v867_v39 = vadd.f32 %v866_v38, %v864_v37 }
 0x776   :  { %v868_v41 = vrot.slane %v867_v39, 4 }
 0x778   :  { %v869_v8 = vadd.f32 %v868_v41, %v867_v39 }
 0x77a   :  { %v870_v49 = vrot.slane %v869_v8, 2 }
 0x77c   :  { %v871_v40 = vadd.f32 %v870_v49, %v869_v8 }
 0x77e   :  { %v872_v50 = vrot.slane %v871_v40, 1 }
 0x780   :  { %v873_v23 = vadd.f32 %v872_v50, %v871_v40 }
 0x782   :  { %1445 = vmatmul.mubr.f32.vlgmr.msra.gmra.mxu0 %v873_v23 }
 0x842   :  { %v940_v22 = vpop.f32.mrf.mxu0 }
 0x843   :  { %1450 = vmatmul.mubr.msk.f32.vlgmr.msra.gmra.mxu1 %vm277_vm5, %v940_v22 }
 0x844   :  { %v1446_v51 = vpop.f32.mrf.mxu0 }
 0x903   :  { %v1013_v48 = vpop.f32.mrf.mxu1 }
 0x904   :  { %v1017_v52 = vmul.f32 0.00048828125, %v1013_v48 }
 0x905   :  { %v1451_v53 = vpop.f32.mrf.mxu1 }
 0x906   :  { %v1018_v54 = vadd.f32 1e-08, %v1017_v52 }
 0x908   :  { %1480 = vrsqrt.f32 %v1018_v54 }
 0x915   :  { %v1481_v9 = vpop.eup %1480 }
 0x916   :  { %v1023_v11 = vrot.slane %v1481_v9, %v1668_v18 }
 0x918   :  { %v1026_v58 = vmul.f32 %v1023_v11, %v859_v31  ;;  %v1024_v13 = vmul.f32 %v1023_v11, %v857_v29  ;;  %v1027_v59 = vmul.f32 %v1023_v11, %v860_v32  ;;  %v1025_v60 = vmul.f32 %v1023_v11, %v858_v30 }
 0x91a   :  { %v1046_v62 = vmul.f32 %v1038_v55, %v1026_v58  ;;  %v1044_v63 = vmul.f32 %v1030_v21, %v1024_v13  ;;  %v1047_v4 = vmul.f32 %v1042_v7, %v1027_v59  ;;  %v1045_v5 = vmul.f32 %v1034_v46, %v1025_v60 }
 0x91c   :  { %v1064_v16 = vadd.f32 %v1050_v56, %v1044_v63  ;;  %v1066_v17 = vadd.f32 %v1058_v57, %v1046_v62  ;;  %v1067_v24 = vadd.f32 %v1062_v15, %v1047_v4  ;;  %v1065_v25 = vadd.f32 %v1054_v61, %v1045_v5 }
 0x91e   :  { %v1068_v26 = vmax.f32 %v1064_v16, 0.0  ;;  %v1070_v27 = vmax.f32 %v1066_v17, 0.0  ;;  %v1071_v28 = vmax.f32 %v1067_v24, 0.0  ;;  %v1069_v42 = vmax.f32 %v1065_v25, 0.0 }
 0x920   :  { %v1144_v43 = vmul.f32 -1.442695, %v1068_v26  ;;  %v1146_v18 = vmul.f32 -1.442695, %v1070_v27  ;;  %v1147_v44 = vmul.f32 -1.442695, %v1071_v28 }
 0x921   :  { %v1145_v45 = vmul.f32 -1.442695, %v1069_v42 }
 0x922   :  { %1482 = vpow2.f32 %v1144_v43 }
 0x923   :  { %1484 = vpow2.f32 %v1146_v18 }
 0x924   :  { %1486 = vpow2.f32 %v1147_v44 }
 0x925   :  { %1488 = vpow2.f32 %v1145_v45 }
 0x92f   :  { %v1483_v47 = vpop.eup %1482 }
 0x930   :  { %v1485_v6 = vpop.eup %1484  ;;  %v1084_v10 = vadd.f32 1.0, %v1483_v47 }
 0x931   :  { %v1487_v12 = vpop.eup %1486  ;;  %v1086_v14 = vadd.f32 1.0, %v1485_v6 }
 0x932   :  { %v1489_v29 = vpop.eup %1488  ;;  %1490 = vrcp.f32 %v1084_v10  ;;  %v1087_v30 = vadd.f32 1.0, %v1487_v12 }
 0x933   :  { %1492 = vrcp.f32 %v1086_v14  ;;  %v1085_v31 = vadd.f32 1.0, %v1489_v29 }
 0x934   :  { %1494 = vrcp.f32 %v1087_v30 }
 0x935   :  { %1496 = vrcp.f32 %v1085_v31 }
 0x93f   :  { %v1491_v32 = vpop.eup %1490 }
 0x940   :  { %v1493_v33 = vpop.eup %1492  ;;  %v1096_v34 = vmul.f32 %v1491_v32, %v1594_v3 }
 0x941   :  { %v1495_v35 = vpop.eup %1494  ;;  %v1098_v36 = vmul.f32 %v1493_v33, %v1589_v2 }
 0x942   :  { %v1497_v37 = vpop.eup %1496  ;;  %v1099_v38 = vmul.f32 %v1495_v35, %v1575_v0  ;;  %1100 = vst [vmem:[#allocation2] sm:$0xff] %v1096_v34 }
 0x943   :  { %v1097_v39 = vmul.f32 %v1497_v37, %v1580_v1  ;;  %1102 = vst [vmem:[#allocation2 + $0x10] sm:$0xff] %v1098_v36 }
 0x944   :  { %1103 = vst [vmem:[#allocation2 + $0x18] sm:$0xff] %v1099_v38 }
 0x945   :  { %1101 = vst [vmem:[#allocation2 + $0x8] sm:$0xff] %v1097_v39 }
 0x946   :  { %1509 = shalt.err (!%p1506_p4)
}
 0x947   :  { %s1530_s16 = smov 128   ;;  %s1531_s17 = smov 8  }
 0x948   :  { %1115 = dma.vmem_to_hbm [thread:$0]  %s1110_s14, 512, %s1993_s7, [#allocation3], %s1530_s16, %s1530_s16, %s1531_s17  }
 0x949   :  { %1518 = dma.done.wait [#allocation3], 512  }
 0x94a   :  { %1519 = vsyncadd [#allocation3], 4294966784 }
 0x94b   :  { %1119 = vsyncpa [#allocation3], 1 }

</bundles_post_ra>
